<compile_context>
chip_gen: v7x
topology: tpu7x:2x2x1
jax: 0.10.0
libtpu: 0.0.40
codegen_flags: <defaults>
</compile_context>

<pallas_src>
import functools
import math

import jax
import jax.numpy as jnp
from jax import lax
from jax.experimental import pallas as pl
from jax.experimental.pallas import tpu as pltpu


# ---------------------------------------------------------------------------
# Fused kernel: QKV projection + scaled dot-product attention for ONE batch
# element, all heads.  Runs once per grid step b.
# ---------------------------------------------------------------------------
def _mha_kernel(*refs, n_heads, masked):
    if masked:
        x_ref, w_ref, b_ref, mrow_ref, mcol_ref, o_ref = refs
    else:
        x_ref, w_ref, b_ref, o_ref = refs

    S = x_ref.shape[1]
    H = x_ref.shape[2]
    D = H // n_heads

    x = x_ref[0]                     # (S, H)  bf16
    w = w_ref[...]                   # (H, 3H) bf16, 1/sqrt(D) folded into Q cols

    # Fused QKV projection on the MXU, f32 accumulation, bias added in f32.
    qkv = jnp.dot(x, w, preferred_element_type=jnp.float32) + b_ref[...]   # (S,3H) f32

    if masked:
        # Outer product of the (S,) mask built on the VPU in-kernel:
        # position (i, j) is masked iff mask[i] != 0 AND mask[j] != 0
        # (matches mask.unsqueeze(-1) * mask.unsqueeze(-2) in the reference).
        prod = mrow_ref[0] * mcol_ref[0]          # (S, S) int32
        masked_pos = prod != 0

    outs = []
    for h in range(n_heads):
        qh = qkv[:, h * D:(h + 1) * D].astype(jnp.bfloat16)              # scaled q
        kh = qkv[:, H + h * D:H + (h + 1) * D].astype(jnp.bfloat16)
        vh = qkv[:, 2 * H + h * D:2 * H + (h + 1) * D].astype(jnp.bfloat16)

        # (S, S) scores: contract last dims directly (no k.T relayout),
        # bf16 operands, f32 accumulation.
        s = lax.dot_general(qh, kh, (((1,), (1,)), ((), ())),
                            preferred_element_type=jnp.float32)
        if masked:
            # Large finite negative (Python literal, not a captured constant):
            # fully-masked rows degrade to uniform instead of NaN.
            s = jnp.where(masked_pos, -1e30, s)

        # Numerically-stable softmax in f32.
        m = jnp.max(s, axis=-1, keepdims=True)
        p = jnp.exp(s - m)
        denom = jnp.sum(p, axis=-1, keepdims=True)

        o = jnp.dot(p.astype(jnp.bfloat16), vh,
                    preferred_element_type=jnp.float32)
        # Normalization folded into the (S, D) output via EUP reciprocal.
        o = o * pl.reciprocal(denom, approx=True)
        outs.append(o)

    # Single lane-dense store in the final (B, S, H) layout, matching
    # permute(1, 2, 0, 3).view(B, S, H) of the reference.
    o_ref[0] = jnp.concatenate(outs, axis=-1).astype(o_ref.dtype)


# ---------------------------------------------------------------------------
# Wrapper
# ---------------------------------------------------------------------------
def multi_head_attention(inputs, mask, params, n_heads):
    """inputs: (B, S, H) float32; mask: (B, S) int or None."""
    B, S, H = inputs.shape
    assert H % n_heads == 0
    D = H // n_heads
    wq, bq, wk, bk, wv, bv = params

    # Fold 1/sqrt(D) into the Q weight/bias at trace time (free), pack the
    # three projections into one (H, 3H) bf16 weight kept VMEM-resident.
    scale = 1.0 / math.sqrt(D)
    w_qkv = jnp.concatenate([wq * scale, wk, wv], axis=1).astype(jnp.bfloat16)
    b_qkv = (jnp.concatenate([bq * scale, bk, bv])
             .reshape(1, 3 * H).astype(jnp.float32))

    x_bf16 = inputs.astype(jnp.bfloat16)     # halves input DMA bytes

    common_specs = [
        pl.BlockSpec((1, S, H), lambda b: (b, 0, 0)),       # pipelined over batch
        pl.BlockSpec((H, 3 * H), lambda b: (0, 0)),         # VMEM-resident weight
        pl.BlockSpec((1, 3 * H), lambda b: (0, 0)),         # VMEM-resident bias
    ]

    if mask is not None:
        m = mask.astype(jnp.int32)
        args = (x_bf16, w_qkv, b_qkv, m.reshape(B, S, 1), m.reshape(B, 1, S))
        in_specs = common_specs + [
            pl.BlockSpec((1, S, 1), lambda b: (b, 0, 0)),
            pl.BlockSpec((1, 1, S), lambda b: (b, 0, 0)),
        ]
        kernel = functools.partial(_mha_kernel, n_heads=n_heads, masked=True)
    else:
        args = (x_bf16, w_qkv, b_qkv)
        in_specs = common_specs
        kernel = functools.partial(_mha_kernel, n_heads=n_heads, masked=False)

    return pl.pallas_call(
        kernel,
        out_shape=jax.ShapeDtypeStruct((B, S, H), jnp.float32),
        grid_spec=pltpu.PrefetchScalarGridSpec(
            num_scalar_prefetch=0,
            grid=(B,),
            in_specs=in_specs,
            out_specs=pl.BlockSpec((1, S, H), lambda b: (b, 0, 0)),
        ),
        compiler_params=pltpu.CompilerParams(
            dimension_semantics=("parallel",),
            vmem_limit_bytes=32 * 1024 * 1024),
    )(*args)


# ---------------------------------------------------------------------------
# Pure-JAX reference (mirrors the PyTorch forward exactly, in f32)
# ---------------------------------------------------------------------------
def _reference(inputs, mask, params, n_heads):
    B, S, H = inputs.shape
    D = H // n_heads
    wq, bq, wk, bk, wv, bv = params
    q = inputs @ wq + bq
    k = inputs @ wk + bk
    v = inputs @ wv + bv

    def split(t):
        return (t.reshape(B, S, n_heads, D)
                 .transpose(2, 0, 1, 3)
                 .reshape(n_heads * B, S, D))

    qh, kh, vh = split(q), split(k), split(v)
    scores = jnp.einsum('bqd,bkd->bqk', qh, kh) / math.sqrt(D)
    if mask is not None:
        m = mask.astype(jnp.int32)
        msq = m[:, :, None] * m[:, None, :]            # (B, S, S)
        msq = jnp.tile(msq[None], (n_heads, 1, 1, 1)).reshape(scores.shape)
        scores = jnp.where(msq != 0, -jnp.inf, scores)
    attn = jax.nn.softmax(scores, axis=-1)
    out = jnp.einsum('bqk,bkd->bqd', attn, vh)
    return (out.reshape(n_heads, B, S, D)
               .transpose(1, 2, 0, 3)
               .reshape(B, S, H))


if __name__ == "__main__":
    B, S, H, n_heads = 2, 8, 32, 4

    key = jax.random.PRNGKey(0)
    kx, km, kwq, kbq, kwk, kbk, kwv, kbv = jax.random.split(key, 8)

    inputs = jax.random.normal(kx, (B, S, H), jnp.float32)

    # mask semantics match torch: positions where mask != 0 are masked out.
    mask = (jax.random.uniform(km, (B, S)) < 0.3).astype(jnp.int32)
    mask = mask.at[:, 0].set(0)   # keep at least one unmasked key per row
                                  # (reference uses -inf and would NaN otherwise)

    # deterministic PyTorch-Linear-style init: U(-1/sqrt(H), 1/sqrt(H))
    bound = 1.0 / math.sqrt(H)
    def uni(k, shape):
        return jax.random.uniform(k, shape, jnp.float32, -bound, bound)
    params = (uni(kwq, (H, H)), uni(kbq, (H,)),
              uni(kwk, (H, H)), uni(kbk, (H,)),
              uni(kwv, (H, H)), uni(kbv, (H,)))

    # tolerance accommodates bf16 MXU operands (f32 accumulation) + approx recip
    ATOL = RTOL = 4e-2

    # masked path
    out = jax.block_until_ready(
        multi_head_attention(inputs, mask, params, n_heads))
    ref = _reference(inputs, mask, params, n_heads)
    assert out.shape == (B, S, H)
    assert jnp.allclose(out, ref, atol=ATOL, rtol=RTOL), "mismatch (masked)"

    # no-mask path (dedicated kernel, no dummy mask DMA)
    out_nm = jax.block_until_ready(
        multi_head_attention(inputs, None, params, n_heads))
    ref_nm = _reference(inputs, None, params, n_heads)
    assert jnp.allclose(out_nm, ref_nm, atol=ATOL, rtol=RTOL), "mismatch (no mask)"

    print("KERNEL_OK")
</pallas_src>

<mosaic_0001>
module attributes {stable_mosaic.version = 11 : i64} {
  func.func @_mha_kernel(%arg0: i32, %arg1: memref<1x8x32xbf16, #tpu.memory_space<vmem>>, %arg2: memref<32x96xbf16, #tpu.memory_space<vmem>>, %arg3: memref<1x96xf32, #tpu.memory_space<vmem>>, %arg4: memref<1x8x1xi32, #tpu.memory_space<vmem>>, %arg5: memref<1x1x8xi32, #tpu.memory_space<vmem>>, %arg6: memref<1x8x32xf32, #tpu.memory_space<vmem>>) attributes {dimension_semantics = [#tpu.dimension_semantics<parallel>], iteration_bounds = array<i64: 2>, scalar_prefetch = 0 : i64, scratch_operands = 0 : i64, tpu.core_type = #tpu.core_type<tc>, window_params = [{transform_indices = @transform_0, window_bounds = array<i64: 1, 8, 32>}, {pipeline_mode = #tpu.pipeline_mode<synchronous>, transform_indices = @transform_1, window_bounds = array<i64: 32, 96>}, {pipeline_mode = #tpu.pipeline_mode<synchronous>, transform_indices = @transform_2, window_bounds = array<i64: 1, 96>}, {transform_indices = @transform_3, window_bounds = array<i64: 1, 8, 1>}, {transform_indices = @transform_4, window_bounds = array<i64: 1, 1, 8>}, {transform_indices = @transform_5, window_bounds = array<i64: 1, 8, 32>}]} {
    %c0 = arith.constant 0 : index
    %c0_0 = arith.constant 0 : index
    %c0_1 = arith.constant 0 : index
    %0 = vector.load %arg1[%c0, %c0_0, %c0_1] : memref<1x8x32xbf16, #tpu.memory_space<vmem>>, vector<1x8x32xbf16>
    %1 = vector.shape_cast %0 : vector<1x8x32xbf16> to vector<8x32xbf16>
    %c0_2 = arith.constant 0 : index
    %c0_3 = arith.constant 0 : index
    %2 = vector.load %arg2[%c0_2, %c0_3] : memref<32x96xbf16, #tpu.memory_space<vmem>>, vector<32x96xbf16>
    %cst = arith.constant dense<0.000000e+00> : vector<8x96xf32>
    %3 = tpu.matmul %1, %2, %cst {dimension_numbers = #tpu.dot_dimension_numbers<[1], [0], [0], [1], [0, 0, 1, 1], [], []>} : vector<8x32xbf16>, vector<32x96xbf16>, vector<8x96xf32> -> vector<8x96xf32>
    %c0_4 = arith.constant 0 : index
    %c0_5 = arith.constant 0 : index
    %4 = vector.load %arg3[%c0_4, %c0_5] : memref<1x96xf32, #tpu.memory_space<vmem>>, vector<1x96xf32>
    %5 = vector.broadcast %4 : vector<1x96xf32> to vector<8x96xf32>
    %6 = arith.addf %3, %5 : vector<8x96xf32>
    %c0_6 = arith.constant 0 : index
    %c0_7 = arith.constant 0 : index
    %c0_8 = arith.constant 0 : index
    %7 = vector.load %arg4[%c0_6, %c0_7, %c0_8] : memref<1x8x1xi32, #tpu.memory_space<vmem>>, vector<1x8x1xi32>
    %8 = vector.shape_cast %7 : vector<1x8x1xi32> to vector<8x1xi32>
    %c0_9 = arith.constant 0 : index
    %c0_10 = arith.constant 0 : index
    %c0_11 = arith.constant 0 : index
    %9 = vector.load %arg5[%c0_9, %c0_10, %c0_11] : memref<1x1x8xi32, #tpu.memory_space<vmem>>, vector<1x1x8xi32>
    %10 = vector.shape_cast %9 : vector<1x1x8xi32> to vector<1x8xi32>
    %11 = vector.broadcast %8 : vector<8x1xi32> to vector<8x8xi32>
    %12 = vector.broadcast %10 : vector<1x8xi32> to vector<8x8xi32>
    %13 = arith.muli %11, %12 : vector<8x8xi32>
    %c0_i32 = arith.constant 0 : i32
    %14 = vector.broadcast %c0_i32 : i32 to vector<8x8xi32>
    %15 = arith.cmpi ne, %13, %14 : vector<8x8xi32>
    %16 = vector.extract_strided_slice %6 {offsets = [0, 0], sizes = [8, 8], strides = [1, 1]} : vector<8x96xf32> to vector<8x8xf32>
    %17 = arith.truncf %16 : vector<8x8xf32> to vector<8x8xbf16>
    %18 = vector.extract_strided_slice %6 {offsets = [0, 32], sizes = [8, 8], strides = [1, 1]} : vector<8x96xf32> to vector<8x8xf32>
    %19 = arith.truncf %18 : vector<8x8xf32> to vector<8x8xbf16>
    %20 = vector.extract_strided_slice %6 {offsets = [0, 64], sizes = [8, 8], strides = [1, 1]} : vector<8x96xf32> to vector<8x8xf32>
    %21 = arith.truncf %20 : vector<8x8xf32> to vector<8x8xbf16>
    %cst_12 = arith.constant dense<0.000000e+00> : vector<8x8xf32>
    %22 = tpu.matmul %17, %19, %cst_12 {dimension_numbers = #tpu.dot_dimension_numbers<[1], [1], [0], [0], [0, 0, 1, 0], [], []>} : vector<8x8xbf16>, vector<8x8xbf16>, vector<8x8xf32> -> vector<8x8xf32>
    %cst_13 = arith.constant -1.000000e+30 : f32
    %23 = vector.broadcast %cst_13 : f32 to vector<8x8xf32>
    %24 = arith.select %15, %23, %22 : vector<8x8xi1>, vector<8x8xf32>
    %cst_14 = arith.constant dense<0xFF800000> : vector<8xf32>
    %25 = vector.multi_reduction <maximumf>, %24, %cst_14 [1] : vector<8x8xf32> to vector<8xf32>
    %26 = vector.shape_cast %25 : vector<8xf32> to vector<8x1xf32>
    %27 = vector.broadcast %26 : vector<8x1xf32> to vector<8x8xf32>
    %28 = arith.subf %24, %27 : vector<8x8xf32>
    %29 = math.exp %28 : vector<8x8xf32>
    %cst_15 = arith.constant dense<0.000000e+00> : vector<8xf32>
    %30 = vector.multi_reduction <add>, %29, %cst_15 [1] : vector<8x8xf32> to vector<8xf32>
    %31 = vector.shape_cast %30 : vector<8xf32> to vector<8x1xf32>
    %32 = arith.truncf %29 : vector<8x8xf32> to vector<8x8xbf16>
    %cst_16 = arith.constant dense<0.000000e+00> : vector<8x8xf32>
    %33 = tpu.matmul %32, %21, %cst_16 {dimension_numbers = #tpu.dot_dimension_numbers<[1], [0], [0], [1], [0, 0, 1, 1], [], []>} : vector<8x8xbf16>, vector<8x8xbf16>, vector<8x8xf32> -> vector<8x8xf32>
    %34 = tpu.reciprocal %31 {approx = true} : vector<8x1xf32> -> vector<8x1xf32>
    %35 = vector.broadcast %34 : vector<8x1xf32> to vector<8x8xf32>
    %36 = arith.mulf %33, %35 : vector<8x8xf32>
    %37 = vector.extract_strided_slice %6 {offsets = [0, 8], sizes = [8, 8], strides = [1, 1]} : vector<8x96xf32> to vector<8x8xf32>
    %38 = arith.truncf %37 : vector<8x8xf32> to vector<8x8xbf16>
    %39 = vector.extract_strided_slice %6 {offsets = [0, 40], sizes = [8, 8], strides = [1, 1]} : vector<8x96xf32> to vector<8x8xf32>
    %40 = arith.truncf %39 : vector<8x8xf32> to vector<8x8xbf16>
    %41 = vector.extract_strided_slice %6 {offsets = [0, 72], sizes = [8, 8], strides = [1, 1]} : vector<8x96xf32> to vector<8x8xf32>
    %42 = arith.truncf %41 : vector<8x8xf32> to vector<8x8xbf16>
    %cst_17 = arith.constant dense<0.000000e+00> : vector<8x8xf32>
    %43 = tpu.matmul %38, %40, %cst_17 {dimension_numbers = #tpu.dot_dimension_numbers<[1], [1], [0], [0], [0, 0, 1, 0], [], []>} : vector<8x8xbf16>, vector<8x8xbf16>, vector<8x8xf32> -> vector<8x8xf32>
    %cst_18 = arith.constant -1.000000e+30 : f32
    %44 = vector.broadcast %cst_18 : f32 to vector<8x8xf32>
    %45 = arith.select %15, %44, %43 : vector<8x8xi1>, vector<8x8xf32>
    %cst_19 = arith.constant dense<0xFF800000> : vector<8xf32>
    %46 = vector.multi_reduction <maximumf>, %45, %cst_19 [1] : vector<8x8xf32> to vector<8xf32>
    %47 = vector.shape_cast %46 : vector<8xf32> to vector<8x1xf32>
    %48 = vector.broadcast %47 : vector<8x1xf32> to vector<8x8xf32>
    %49 = arith.subf %45, %48 : vector<8x8xf32>
    %50 = math.exp %49 : vector<8x8xf32>
    %cst_20 = arith.constant dense<0.000000e+00> : vector<8xf32>
    %51 = vector.multi_reduction <add>, %50, %cst_20 [1] : vector<8x8xf32> to vector<8xf32>
    %52 = vector.shape_cast %51 : vector<8xf32> to vector<8x1xf32>
    %53 = arith.truncf %50 : vector<8x8xf32> to vector<8x8xbf16>
    %cst_21 = arith.constant dense<0.000000e+00> : vector<8x8xf32>
    %54 = tpu.matmul %53, %42, %cst_21 {dimension_numbers = #tpu.dot_dimension_numbers<[1], [0], [0], [1], [0, 0, 1, 1], [], []>} : vector<8x8xbf16>, vector<8x8xbf16>, vector<8x8xf32> -> vector<8x8xf32>
    %55 = tpu.reciprocal %52 {approx = true} : vector<8x1xf32> -> vector<8x1xf32>
    %56 = vector.broadcast %55 : vector<8x1xf32> to vector<8x8xf32>
    %57 = arith.mulf %54, %56 : vector<8x8xf32>
    %58 = vector.extract_strided_slice %6 {offsets = [0, 16], sizes = [8, 8], strides = [1, 1]} : vector<8x96xf32> to vector<8x8xf32>
    %59 = arith.truncf %58 : vector<8x8xf32> to vector<8x8xbf16>
    %60 = vector.extract_strided_slice %6 {offsets = [0, 48], sizes = [8, 8], strides = [1, 1]} : vector<8x96xf32> to vector<8x8xf32>
    %61 = arith.truncf %60 : vector<8x8xf32> to vector<8x8xbf16>
    %62 = vector.extract_strided_slice %6 {offsets = [0, 80], sizes = [8, 8], strides = [1, 1]} : vector<8x96xf32> to vector<8x8xf32>
    %63 = arith.truncf %62 : vector<8x8xf32> to vector<8x8xbf16>
    %cst_22 = arith.constant dense<0.000000e+00> : vector<8x8xf32>
    %64 = tpu.matmul %59, %61, %cst_22 {dimension_numbers = #tpu.dot_dimension_numbers<[1], [1], [0], [0], [0, 0, 1, 0], [], []>} : vector<8x8xbf16>, vector<8x8xbf16>, vector<8x8xf32> -> vector<8x8xf32>
    %cst_23 = arith.constant -1.000000e+30 : f32
    %65 = vector.broadcast %cst_23 : f32 to vector<8x8xf32>
    %66 = arith.select %15, %65, %64 : vector<8x8xi1>, vector<8x8xf32>
    %cst_24 = arith.constant dense<0xFF800000> : vector<8xf32>
    %67 = vector.multi_reduction <maximumf>, %66, %cst_24 [1] : vector<8x8xf32> to vector<8xf32>
    %68 = vector.shape_cast %67 : vector<8xf32> to vector<8x1xf32>
    %69 = vector.broadcast %68 : vector<8x1xf32> to vector<8x8xf32>
    %70 = arith.subf %66, %69 : vector<8x8xf32>
    %71 = math.exp %70 : vector<8x8xf32>
    %cst_25 = arith.constant dense<0.000000e+00> : vector<8xf32>
    %72 = vector.multi_reduction <add>, %71, %cst_25 [1] : vector<8x8xf32> to vector<8xf32>
    %73 = vector.shape_cast %72 : vector<8xf32> to vector<8x1xf32>
    %74 = arith.truncf %71 : vector<8x8xf32> to vector<8x8xbf16>
    %cst_26 = arith.constant dense<0.000000e+00> : vector<8x8xf32>
    %75 = tpu.matmul %74, %63, %cst_26 {dimension_numbers = #tpu.dot_dimension_numbers<[1], [0], [0], [1], [0, 0, 1, 1], [], []>} : vector<8x8xbf16>, vector<8x8xbf16>, vector<8x8xf32> -> vector<8x8xf32>
    %76 = tpu.reciprocal %73 {approx = true} : vector<8x1xf32> -> vector<8x1xf32>
    %77 = vector.broadcast %76 : vector<8x1xf32> to vector<8x8xf32>
    %78 = arith.mulf %75, %77 : vector<8x8xf32>
    %79 = vector.extract_strided_slice %6 {offsets = [0, 24], sizes = [8, 8], strides = [1, 1]} : vector<8x96xf32> to vector<8x8xf32>
    %80 = arith.truncf %79 : vector<8x8xf32> to vector<8x8xbf16>
    %81 = vector.extract_strided_slice %6 {offsets = [0, 56], sizes = [8, 8], strides = [1, 1]} : vector<8x96xf32> to vector<8x8xf32>
    %82 = arith.truncf %81 : vector<8x8xf32> to vector<8x8xbf16>
    %83 = vector.extract_strided_slice %6 {offsets = [0, 88], sizes = [8, 8], strides = [1, 1]} : vector<8x96xf32> to vector<8x8xf32>
    %84 = arith.truncf %83 : vector<8x8xf32> to vector<8x8xbf16>
    %cst_27 = arith.constant dense<0.000000e+00> : vector<8x8xf32>
    %85 = tpu.matmul %80, %82, %cst_27 {dimension_numbers = #tpu.dot_dimension_numbers<[1], [1], [0], [0], [0, 0, 1, 0], [], []>} : vector<8x8xbf16>, vector<8x8xbf16>, vector<8x8xf32> -> vector<8x8xf32>
    %cst_28 = arith.constant -1.000000e+30 : f32
    %86 = vector.broadcast %cst_28 : f32 to vector<8x8xf32>
    %87 = arith.select %15, %86, %85 : vector<8x8xi1>, vector<8x8xf32>
    %cst_29 = arith.constant dense<0xFF800000> : vector<8xf32>
    %88 = vector.multi_reduction <maximumf>, %87, %cst_29 [1] : vector<8x8xf32> to vector<8xf32>
    %89 = vector.shape_cast %88 : vector<8xf32> to vector<8x1xf32>
    %90 = vector.broadcast %89 : vector<8x1xf32> to vector<8x8xf32>
    %91 = arith.subf %87, %90 : vector<8x8xf32>
    %92 = math.exp %91 : vector<8x8xf32>
    %cst_30 = arith.constant dense<0.000000e+00> : vector<8xf32>
    %93 = vector.multi_reduction <add>, %92, %cst_30 [1] : vector<8x8xf32> to vector<8xf32>
    %94 = vector.shape_cast %93 : vector<8xf32> to vector<8x1xf32>
    %95 = arith.truncf %92 : vector<8x8xf32> to vector<8x8xbf16>
    %cst_31 = arith.constant dense<0.000000e+00> : vector<8x8xf32>
    %96 = tpu.matmul %95, %84, %cst_31 {dimension_numbers = #tpu.dot_dimension_numbers<[1], [0], [0], [1], [0, 0, 1, 1], [], []>} : vector<8x8xbf16>, vector<8x8xbf16>, vector<8x8xf32> -> vector<8x8xf32>
    %97 = tpu.reciprocal %94 {approx = true} : vector<8x1xf32> -> vector<8x1xf32>
    %98 = vector.broadcast %97 : vector<8x1xf32> to vector<8x8xf32>
    %99 = arith.mulf %96, %98 : vector<8x8xf32>
    %100 = tpu.concatenate %36, %57, %78, %99 in 1 : vector<8x8xf32>, vector<8x8xf32>, vector<8x8xf32>, vector<8x8xf32> -> vector<8x32xf32>
    %c0_32 = arith.constant 0 : index
    %c0_33 = arith.constant 0 : index
    %c0_34 = arith.constant 0 : index
    %101 = vector.load %arg6[%c0_32, %c0_33, %c0_34] : memref<1x8x32xf32, #tpu.memory_space<vmem>>, vector<1x8x32xf32>
    %102 = vector.shape_cast %101 : vector<1x8x32xf32> to vector<8x32xf32>
    %103 = vector.shape_cast %100 : vector<8x32xf32> to vector<1x8x32xf32>
    tpu.vector_store %arg6[%c0_32, %c0_33, %c0_34], %103 {strides = array<i32>} : memref<1x8x32xf32, #tpu.memory_space<vmem>>, vector<1x8x32xf32>,
    return
  }
  func.func @transform_0(%arg0: i32) -> (i32, i32, i32) {
    %c0_i32 = arith.constant 0 : i32
    %c0_i32_0 = arith.constant 0 : i32
    %c0_i32_1 = arith.constant 0 : i32
    return %arg0, %c0_i32, %c0_i32_0 : i32, i32, i32
  }
  func.func @transform_1(%arg0: i32) -> (i32, i32) {
    %c0_i32 = arith.constant 0 : i32
    %c0_i32_0 = arith.constant 0 : i32
    %c0_i32_1 = arith.constant 0 : i32
    return %c0_i32, %c0_i32_0 : i32, i32
  }
  func.func @transform_2(%arg0: i32) -> (i32, i32) {
    %c0_i32 = arith.constant 0 : i32
    %c0_i32_0 = arith.constant 0 : i32
    %c0_i32_1 = arith.constant 0 : i32
    return %c0_i32, %c0_i32_0 : i32, i32
  }
  func.func @transform_3(%arg0: i32) -> (i32, i32, i32) {
    %c0_i32 = arith.constant 0 : i32
    %c0_i32_0 = arith.constant 0 : i32
    %c0_i32_1 = arith.constant 0 : i32
    return %arg0, %c0_i32, %c0_i32_0 : i32, i32, i32
  }
  func.func @transform_4(%arg0: i32) -> (i32, i32, i32) {
    %c0_i32 = arith.constant 0 : i32
    %c0_i32_0 = arith.constant 0 : i32
    %c0_i32_1 = arith.constant 0 : i32
    return %arg0, %c0_i32, %c0_i32_0 : i32, i32, i32
  }
  func.func @transform_5(%arg0: i32) -> (i32, i32, i32) {
    %c0_i32 = arith.constant 0 : i32
    %c0_i32_0 = arith.constant 0 : i32
    %c0_i32_1 = arith.constant 0 : i32
    return %arg0, %c0_i32, %c0_i32_0 : i32, i32, i32
  }
}

</mosaic_0001>

<bundles_post_ra>
// kernel: tpu_custom_call.1
= control target key start
LH: loop header
LB: loop body
LE: loop exit
PB: predicated region body
PF: predicated region fallthrough
CT: control target
= control target key end

     0   :  { %10 = vsyncpa [#allocation3], 0  ;;  %s1515_s0 = inlined_call_operand.hbm [shape: bf16[2,8,32], index: 0, kind: input, shape index: {}]   ;;  %s1516_s1 = inlined_call_operand.vmem [shape: bf16[32,96], index: 1, kind: input, shape index: {}]   ;;  %s1517_s2 = inlined_call_operand.vmem [shape: f32[1,96], index: 2, kind: input, shape index: {}]   ;;  %s1518_s3 = inlined_call_operand.vmem [shape: s32[2,8,1], index: 3, kind: input, shape index: {}]   ;;  %s1519_s4 = inlined_call_operand.vmem [shape: s32[2,1,8], index: 4, kind: input, shape index: {}]   ;;  %s1520_s5 = inlined_call_operand.hbm [shape: f32[2,8,32], index: 5, kind: output, shape index: {}]  }
   0x1   :  { %12 = vsyncpa [#allocation3 + $0x1], 0 }
   0x2   :  { %13 = vsyncpa [#allocation4], 0 }
   0x3   :  { %15 = vsyncpa [#allocation4 + $0x1], 0  ;;  %s1251_s18 = smov 0   ;;  %s1253_s19 = smov 0  }
   0x4   :  { %s1255_s20 = smov 0   ;;  %s1257_s21 = smov 0  }
   0x5 LB: > { %s1272_s22 = sadd.s32 4294967295, %s1200_s21   ;;  %s920_s23 = sadd.s32 4294967294, %s1200_s21   ;;  %s1200_s21 = sphi %s1257_s21, %s1537_s21   ;;  %s1196_s20 = sphi %s1255_s20, %s1536_s20   ;;  %s1192_s19 = sphi %s1253_s19, %s1535_s19   ;;  %s1188_s18 = sphi %s1251_s18, %s1534_s18  }
   0x6   : > { %s1276_s24 = sadd.s32 1, %s1200_s21   ;;  %s28_s25 = sadd.s32 1, %s1196_s20 }
   0x7   : > { %s25_s26 = ssub.s32 %s1200_s21, %s1276_s24  ;;  %p35_p0 = scmp.ne.s32.totalorder %s1196_s20, %s1192_s19 }
   0x8   : > { %p26_p1 = scmp.eq.s32.totalorder %s25_s26, 0  ;;  %p36_p2 = scmp.eq.s32.totalorder %s1200_s21, 0 }
   0x9   : > { %p41_p3 = scmp.ne.s32.totalorder %s1192_s19, %s1188_s18  ;;  %p42_p4 = scmp.eq.s32.totalorder %s1272_s22, 0 }
   0xa   : > { %s1288_s27 = scalar_select %p26_p1, %s1196_s20, %s28_s25  }
   0xb   : > { %p1290_p5 = por %p36_p2, %p35_p0  ;;  %p1294_p6 = por %p42_p4, %p41_p3 }
   0xc   : > { %p159_p7 = scmp.eq.s32.totalorder %s1272_s22, 1  ;;  %p165_p8 = scmp.eq.s32.totalorder %s920_s23, 1 }
   0xd   : > { %p1033_p10 = scmp.lt.s32.totalorder %s1200_s21, 2  ;;  %s191_s7 = sand.u32 1, %s1196_s20  }
   0xe   : > { %p1301_p11 = por %p159_p7, %p35_p0  ;;  %p1305_p12 = por %p165_p8, %p41_p3 }
   0xf   : > { %s924_s8 = sshll.u32 %s1200_s21, 6  ;;  %s923_s9 = sshll.u32 %s191_s7, 2 }
  0x10   : > { %s1524_s30 = scalar_select %p1301_p11, 1, 0 }
  0x11   : > { %s1525_s6 = scalar_select %p1305_p12, 1, 0 }
  0x12   : > { %s1314_s12 = scalar_lea.hbm %s1515_s0, %s924_s8  ;;  %s195_s13 = scalar_lea.vmem [#allocation2], %s923_s9 }
  0x13   : > { %s202_s14 = sshll.u32 %s195_s13, 4  ;;  %p1318_p13 = pnand %p1033_p10, %p1290_p5  ;;  %s1322_s14 = int_to_ptr.vmem [resolvable:$true] %s202_s14 }
  0x14   : > { %s192_s16 = scalar_lea.sflag [#allocation3], %s191_s7  ;;  %s1104_s17 = scalar_lea.hbm %s1314_s12, 64 }
  0x15   : > { %p1105_p2 = scmp.ne.s32.totalorder %s1314_s12, %s1104_s17  ;;  %p1106_p3 = pneg %p1318_p13 }
  0x16   : > { %s1109_s26 = scalar_lea.hbm %s1515_s0, 128  ;;  %p1110_p5 = scmp.lt.u32.totalorder %s1314_s12, %s1515_s0 }
  0x17   : > { %p1107_p4 = pnand %p1106_p3, %p1105_p2  ;;  %p1111_p8 = scmp.lt.u32.totalorder %s1109_s26, %s1104_s17 }
  0x18   : > { %p1113_p9 = scmp.lt.u32.totalorder %s1104_s17, %s1314_s12 }
  0x19   : > { %p1108_p7 = pneg %p1107_p4  ;;  %p1112_p10 = por %p1111_p8, %p1110_p5 }
  0x1b   : > { %p1114_p0 = por %p1113_p9, %p1112_p10 }
  0x1d   : > { %p1115_p1 = pnand %p1114_p0, %p1108_p7 }
  0x1f   : > { %1118 = shalt.err (!%p1115_p1)
}
  0x20   : > { %s1119_s7 = scalar_lea.vmem %s1322_s14, 64  ;;  %s1202_s9 = smov [#allocation2]  }
  0x21   : > { %p1120_p2 = scmp.ne.s32.totalorder %s1322_s14, %s1119_s7  ;;  %s1124_s10 = sshll.u32 %s1202_s9, 4  ;;  %s1125_s10 = int_to_ptr.vmem [resolvable:$false] %s1124_s10 }
  0x22   : > { %s1126_s11 = scalar_lea.vmem %s1125_s10, 128  ;;  %p1127_p11 = scmp.lt.s32.totalorder %s1322_s14, %s1125_s10 }
  0x23   : > { %p1122_p4 = pnand %p1120_p2, %p1106_p3  ;;  %p1128_p5 = scmp.lt.s32.totalorder %s1126_s11, %s1119_s7 }
  0x25   : > { %p1123_p12 = pneg %p1122_p4  ;;  %p1129_p8 = por %p1128_p5, %p1127_p11 }
  0x27   : > { %p1130_p9 = pnand %p1129_p8, %p1123_p12 }
  0x29   : > { %1133 = shalt.err (!%p1130_p9)
}
  0x2a   : > { %1028 = dma.hbm_to_vmem [thread:$0]  (!%p1318_p13), %s1314_s12, 64, %s1322_s14, %s192_s16  }
  0x2b   : > { %p1527_p0 = scmp.lt.s32.totalorder %s1200_s21, 3  ;;  %p1528_p1 = scmp.ge.s32.totalorder %s1200_s21, 1 }
  0x2d   : > { %p221_p3 = pnand %p1528_p1, %p1527_p0 }
  0x2e   : > { %s1356_s13 = sand.u32 (!%p221_p3), 1, %s1192_s19  }
  0x2f   : > { %224 = sbr.rel (%p221_p3) target bundleno = 1152 (0x480), region = 40  ;;  %s926_s17 = sshll.u32 (!%p221_p3), %s1356_s13, 2 }
  0x30   : > { %s227_s23 = scalar_lea.sflag (!%p221_p3), [#allocation3], %s1356_s13  ;;  %s230_s25 = scalar_lea.vmem (!%p221_p3), [#allocation2], %s926_s17 }
  0x36   : > { %1179 = dma.done.wait (%p1294_p6), %s227_s23, 64  }
  0x37   : > { %1181 = vsyncadd (%p1294_p6), %s227_s23, 4294967232  ;;  %v1203_v0 = vmov 0.0   ;;  %vm1204_vm0 = vmmov 0   ;;  %v1086_v1 = vld [vmem:[%s1516_s1] sm:$0xff]   ;;  %v1087_v2 = vld [vmem:[%s1516_s1 + $0x8] sm:$0xff]   ;;  %vm296_vm1 = vcmask 261120  }
  0x38   : > { %965 = vmatprep.subr.bf16.mxu0 %v1203_v0  ;;  %969 = vmatprep.mubr.msk.bf16.mxu0 %vm1204_vm0, %v1203_v0  ;;  %v272_v3 = vld [vmem:[%s230_s25] sm:$0xf]  ;;  %v1205_v4 = vmov 0   ;;  %p264_p6 = scmp.lt.s32.totalorder %s1272_s22, 1  ;;  %s1206_s8 = smov 120   ;;  %vm355_vm2 = vcmask 64512  }
  0x39   : > { %973 = vmatprep.subr.bf16.mxu1 %v1203_v0  ;;  %975 = vmatprep.mubr.msk.bf16.mxu1 %vm1204_vm0, %v1203_v0  ;;  %v929_v5 = vld [vmem:[%s1517_s2] ss:$0 sm:$0xff]  ;;  %s1207_s7 = smov 96   ;;  %s1208_s10 = smov 80   ;;  %vm418_vm3 = vcmask 1043456   ;;  %vm810_vm5 = vcmask 130048  }
  0x3a   : > { %966 = vmatpush3.bf16.msra.mxu0 %v1086_v1  ;;  %1084 = vset.pattern.permute.xlu1 %v1205_v4  ;;  %s1388_s28 = scalar_select %p264_p6, %s1272_s22, 1  ;;  %vm812_vm6 = vcmask 195584  }
  0x3b   : > { %967 = vmatprep.subr.bf16.mxu0 %v1203_v0  ;;  %1085 = vset.pattern.permute.xlu0 %v1205_v4  ;;  %s1209_s11 = smov 88   ;;  %s1210_s12 = smov 72  }
  0x3c   : > { %s928_s9 = sshll.u32 %s1388_s28, 3  ;;  %s1211_s14 = smov 112  }
  0x3d   : > { %s267_s25 = scalar_lea.vmem %s1518_s3, %s928_s9  ;;  %s1212_s29 = smov 104  }
  0x3e   : > { %968 = vmatpush3.bf16.msra.mxu0 %v1087_v2  ;;  %v340_v12 = vld [vmem:[%s267_s25] sm:$0xff]  ;;  %s1213_s15 = smov 64   ;;  %s1216_s9 = smov 56  }
  0x3f   : > { %979 = vmatprep.subr.bf16.mxu0 %v1203_v0  ;;  %s1219_s17 = smov 24   ;;  %s927_s23 = sshll.u32 %s1356_s13, 3 }
  0x40   : > { %s943_s25 = sshll.u32 %s1272_s22, 7  ;;  %s816_s22 = scalar_lea.sflag [#allocation4], %s1356_s13 }
  0x41   : > { %970 = vmatmul.mubr.msk.bf16.vlgmr.msra.gmra.mrb[0].mxu0 %vm296_vm1, %v272_v3  ;;  %s1470_s16 = scalar_lea.hbm %s1520_s5, %s943_s25  ;;  %p1531_p12 = scmp.ne.s32.totalorder %s1524_s30, 0 }
  0x42   : > { %981 = vmatprep.mubr.msk.bf16.mxu0 %vm1204_vm0, %v1203_v0 }
 0x114   : > { %v334_v6 = vpop.f32.mrb[0].mxu0 }
 0x115   : > { %v335_v7 = vadd.f32 %v929_v5, %v334_v6  ;;  %v971_v8 = vpop.f32.mrb[1].mxu0 }
 0x116   : > { %v337_v9 = vpop.f32.mrb[2].mxu0 }
 0x117   : > { %v1385_v10 = vpack.c.bf16 %v335_v7, %v335_v7  ;;  %v972_v11 = vpop.f32.mrb[3].mxu0 }
 0x119   : > { %464 = vrot.lane.b32.xlu1 %v1385_v10, %s1206_s8  ;;  %353 = vrot.lane.b32.xlu0 %v1385_v10, %s1207_s7  ;;  %s270_s8 = scalar_lea.vmem %s1519_s4, %s1388_s28  ;;  %s1214_s28 = smov 48  }
 0x11a   : > { %v933_v27 = vld [vmem:[%s270_s8] ss:$0 sm:$0xff]  ;;  %s1215_s7 = smov 40   ;;  %s1220_s8 = smov [#allocation5]  }
 0x11d   : > { %577 = vrot.lane.b32.xlu1 %v1385_v10, %s1208_s10  ;;  %466 = vrot.lane.b32.xlu0 %v1385_v10, %s1209_s11  ;;  %s1217_s10 = smov 8   ;;  %s1218_s11 = smov 16  }
 0x121   : > { %688 = vrot.lane.b32.xlu1 %v1385_v10, %s1210_s12  ;;  %575 = vrot.lane.b32.xlu0 %v1385_v10, %s1211_s14  ;;  %s263_s12 = scalar_lea.vmem [#allocation5], %s927_s23 }
 0x122   : > { %s829_s14 = sshll.u32 %s263_s12, 4  ;;  %s1472_s14 = int_to_ptr.vmem [resolvable:$true] %s829_s14 }
 0x123   : > { %s1134_s26 = scalar_lea.vmem %s1472_s14, 128 }
 0x124   : > { %p1135_p11 = scmp.ne.s32.totalorder %s1472_s14, %s1134_s26 }
 0x125   : > { %343 = vperm.xlu1 %1084, %v340_v12   ;;  %686 = vrot.lane.b32.xlu0 %v1385_v10, %s1212_s29 }
 0x126   : > { %p1136_p13 = pnand %p1135_p11, %p1531_p12 }
 0x128   : > { %p1137_p7 = pneg %p1136_p13 }
 0x129   : > { %413 = vrot.lane.b32.xlu1 %v1385_v10, %s1213_s15 }
 0x18b   : > { %v354_v13 = vpop.permute.xlu0 %353  ;;  %v465_v16 = vpop.permute.xlu1 %464 }
 0x18c   : > { %v360_v14 = vsel %vm355_vm2, %v354_v13, 0 }
 0x18d   : > { %974 = vmatpush3.bf16.xpose.msra.mxu1 %v360_v14 }
 0x18e   : > { %985 = vmatprep.subr.bf16.mxu1 %v1203_v0 }
 0x18f   : > { %v467_v15 = vpop.permute.xlu0 %466  ;;  %v578_v18 = vpop.permute.xlu1 %577 }
 0x190   : > { %v472_v17 = vsel %vm355_vm2, %v467_v15, 0  ;;  %v583_v19 = vsel %vm355_vm2, %v578_v18, 0 }
 0x193   : > { %v689_v20 = vpop.permute.xlu1 %688  ;;  %v576_v21 = vpop.permute.xlu0 %575 }
 0x194   : > { %976 = vmatmul.mubr.msk.bf16.vlgmr.msra.gmra.mrb[0].mxu1 %vm355_vm2, %v1385_v10  ;;  %v694_v22 = vsel %vm355_vm2, %v689_v20, 0 }
 0x195   : > { %986 = vmatpush3.bf16.xpose.msra.mxu1 %v472_v17  ;;  %987 = vmatprep.mubr.msk.bf16.mxu1 %vm1204_vm0, %v1203_v0 }
 0x196   : > { %997 = vmatprep.subr.bf16.mxu1 %v1203_v0 }
 0x197   : > { %v687_v26 = vpop.permute.xlu0 %686 }
 0x19c   : > { %988 = vmatmul.mubr.msk.bf16.vlgmr.msra.gmra.mrb[4].mxu1 %vm355_vm2, %v465_v16 }
 0x19d   : > { %998 = vmatpush3.bf16.xpose.msra.mxu1 %v583_v19  ;;  %999 = vmatprep.mubr.msk.bf16.mxu1 %vm1204_vm0, %v1203_v0 }
 0x19e   : > { %1009 = vmatprep.subr.bf16.mxu1 %v1203_v0 }
 0x1a4   : > { %v344_v23 = vpop.permute.xlu1 %343  ;;  %1000 = vmatmul.mubr.msk.bf16.vlgmr.msra.gmra.mrb[8].mxu1 %vm355_vm2, %v576_v21 }
 0x1a5   : > { %1010 = vmatpush3.bf16.xpose.msra.mxu1 %v694_v22  ;;  %1011 = vmatprep.mubr.msk.bf16.mxu1 %vm1204_vm0, %v1203_v0  ;;  %v349_v28 = vmul.u32 %v933_v27, %v344_v23 }
 0x1a7   : > { %vm1426_vm4 = vcmp.ne.s32.totalorder %v349_v28, 0 }
 0x1a8   : > { %v414_v24 = vpop.permute.xlu1 %413 }
 0x1a9   : > { %v420_v25 = vsel %vm418_vm3, %v414_v24, 0 }
 0x1aa   : > { %980 = vmatpush3.bf16.msra.mxu0 %v420_v25 }
 0x1ab   : > { %991 = vmatprep.subr.bf16.mxu0 %v1203_v0 }
 0x1ac   : > { %1012 = vmatmul.mubr.msk.bf16.vlgmr.msra.gmra.mrb[12].mxu1 %vm355_vm2, %v687_v26 }
 0x267   : > { %v396_v30 = vpop.f32.mrb[0].mxu1 }
 0x268   : > { %v402_v31 = vsel %vm1426_vm4, -1e+30, %v396_v30  ;;  %v977_v32 = vpop.f32.mrb[1].mxu1 }
 0x269   : > { %v399_v33 = vpop.f32.mrb[2].mxu1  ;;  %v403_v34 = vsel %vm355_vm2, %v402_v31, -inf }
 0x26a   : > { %404 = vmax.xlane.f32.xlu0 %v403_v34  ;;  %v978_v35 = vpop.f32.mrb[3].mxu1 }
 0x26f   : > { %v508_v36 = vpop.f32.mrb[4].mxu1 }
 0x270   : > { %v514_v37 = vsel %vm1426_vm4, -1e+30, %v508_v36  ;;  %v989_v38 = vpop.f32.mrb[5].mxu1 }
 0x271   : > { %v511_v39 = vpop.f32.mrb[6].mxu1  ;;  %v515_v40 = vsel %vm355_vm2, %v514_v37, -inf }
 0x272   : > { %516 = vmax.xlane.f32.xlu1 %v515_v40  ;;  %v990_v41 = vpop.f32.mrb[7].mxu1 }
 0x277   : > { %v619_v42 = vpop.f32.mrb[8].mxu1 }
 0x278   : > { %v625_v43 = vsel %vm1426_vm4, -1e+30, %v619_v42  ;;  %v1001_v44 = vpop.f32.mrb[9].mxu1 }
 0x279   : > { %v622_v45 = vpop.f32.mrb[10].mxu1  ;;  %v626_v46 = vsel %vm355_vm2, %v625_v43, -inf }
 0x27a   : > { %627 = vmax.xlane.f32.xlu0 %v626_v46  ;;  %v1002_v47 = vpop.f32.mrb[11].mxu1 }
 0x27f   : > { %v730_v48 = vpop.f32.mrb[12].mxu1 }
 0x280   : > { %v736_v49 = vsel %vm1426_vm4, -1e+30, %v730_v48  ;;  %v1013_v50 = vpop.f32.mrb[13].mxu1 }
 0x281   : > { %v733_v51 = vpop.f32.mrb[14].mxu1  ;;  %v737_v52 = vsel %vm355_vm2, %v736_v49, -inf }
 0x282   : > { %738 = vmax.xlane.f32.xlu0 %v737_v52  ;;  %v1014_v53 = vpop.f32.mrb[15].mxu1 }
 0x283   : > { %636 = vrot.lane.b32.xlu1 %v1385_v10, %s1214_s28  ;;  %s1138_s28 = sshll.u32 %s1220_s8, 4  ;;  %s1139_s28 = int_to_ptr.vmem [resolvable:$false] %s1138_s28 }
 0x284   : > { %p1141_p10 = scmp.lt.s32.totalorder %s1472_s14, %s1139_s28 }
 0x287   : > { %747 = vrot.lane.b32.xlu1 %v1385_v10, %s1215_s7  ;;  %s1140_s7 = scalar_lea.vmem %s1139_s28, 256 }
 0x288   : > { %p1142_p2 = scmp.lt.s32.totalorder %s1140_s7, %s1134_s26 }
 0x28a   : > { %p1143_p4 = por %p1142_p2, %p1141_p10 }
 0x28c   : > { %p1144_p5 = pnand %p1143_p4, %p1137_p7 }
 0x298   : > { %525 = vrot.lane.b32.xlu0 %v1385_v10, %s1216_s9 }
 0x2f7   : > { %v405_v54 = vpop.xlane.xlu0 %404 }
 0x2f8   : > { %v406_v55 = vsub.f32 %v402_v31, %v405_v54 }
 0x2fa   : > { %v407_v56 = vmul.f32 1.442695, %v406_v55 }
 0x2fc   : > { %1088 = vpow2.f32 %v407_v56 }
 0x2ff   : > { %v517_v57 = vpop.xlane.xlu1 %516 }
 0x300   : > { %v518_v58 = vsub.f32 %v514_v37, %v517_v57 }
 0x302   : > { %v519_v59 = vmul.f32 1.442695, %v518_v58 }
 0x303   : > { %v637_v9 = vpop.permute.xlu1 %636 }
 0x304   : > { %1090 = vpow2.f32 %v519_v59  ;;  %v642_v13 = vsel %vm418_vm3, %v637_v9, 0 }
 0x306   : > { %v1089_v60 = vpop.eup %1088 }
 0x307   : > { %v628_v61 = vpop.xlane.xlu0 %627  ;;  %v412_v62 = vpack.c.bf16 %v1089_v60, %v1089_v60  ;;  %v748_v14 = vpop.permute.xlu1 %747  ;;  %v409_v19 = vsel %vm355_vm2, %v1089_v60, 0.0 }
 0x308   : > { %v629_v63 = vsub.f32 %v625_v43, %v628_v61  ;;  %v753_v18 = vsel %vm418_vm3, %v748_v14, 0 }
 0x309   : > { %982 = vmatmul.mubr.msk.bf16.vlgmr.msra.gmra.mrb[4].mxu0 %vm355_vm2, %v412_v62 }
 0x30a   : > { %v630_v1 = vmul.f32 1.442695, %v629_v63  ;;  %993 = vmatprep.mubr.msk.bf16.mxu0 %vm1204_vm0, %v1203_v0 }
 0x30c   : > { %1092 = vpow2.f32 %v630_v1 }
 0x30e   : > { %v1091_v2 = vpop.eup %1090 }
 0x30f   : > { %v739_v3 = vpop.xlane.xlu0 %738  ;;  %v521_v4 = vsel %vm355_vm2, %v1091_v2, 0.0  ;;  %v524_v11 = vpack.c.bf16 %v1091_v2, %v1091_v2 }
 0x310   : > { %v740_v5 = vsub.f32 %v736_v49, %v739_v3  ;;  %522 = vadd.xlane.f32.xlu0 %v521_v4 }
 0x312   : > { %v741_v6 = vmul.f32 1.442695, %v740_v5 }
 0x313   : > { %v526_v7 = vpop.permute.xlu0 %525 }
 0x314   : > { %1094 = vpow2.f32 %v741_v6  ;;  %v531_v8 = vsel %vm418_vm3, %v526_v7, 0 }
 0x315   : > { %992 = vmatpush3.bf16.msra.mxu0 %v531_v8 }
 0x316   : > { %v1093_v10 = vpop.eup %1092  ;;  %1003 = vmatprep.subr.bf16.mxu0 %v1203_v0 }
 0x317   : > { %v632_v12 = vsel %vm355_vm2, %v1093_v10, 0.0  ;;  %v635_v16 = vpack.c.bf16 %v1093_v10, %v1093_v10 }
 0x318   : > { %633 = vadd.xlane.f32.xlu1 %v632_v12  ;;  %994 = vmatmul.mubr.msk.bf16.vlgmr.msra.gmra.mrb[8].mxu0 %vm355_vm2, %v524_v11 }
 0x319   : > { %1004 = vmatpush3.bf16.msra.mxu0 %v642_v13  ;;  %1005 = vmatprep.mubr.msk.bf16.mxu0 %vm1204_vm0, %v1203_v0 }
 0x31a   : > { %1015 = vmatprep.subr.bf16.mxu0 %v1203_v0 }
 0x31e   : > { %v1095_v15 = vpop.eup %1094 }
 0x31f   : > { %v743_v17 = vsel %vm355_vm2, %v1095_v15, 0.0  ;;  %v746_v20 = vpack.c.bf16 %v1095_v15, %v1095_v15 }
 0x320   : > { %744 = vadd.xlane.f32.xlu0 %v743_v17  ;;  %1006 = vmatmul.mubr.msk.bf16.vlgmr.msra.gmra.mrb[12].mxu0 %vm355_vm2, %v635_v16 }
 0x321   : > { %1016 = vmatpush3.bf16.msra.mxu0 %v753_v18  ;;  %1017 = vmatprep.mubr.msk.bf16.mxu0 %vm1204_vm0, %v1203_v0 }
 0x324   : > { %410 = vadd.xlane.f32.xlu0 %v409_v19 }
 0x328   : > { %1018 = vmatmul.mubr.msk.bf16.vlgmr.msra.gmra.mrb[16].mxu0 %vm355_vm2, %v746_v20 }
 0x39d   : > { %v523_v23 = vpop.xlane.xlu0 %522 }
 0x39e   : > { %1096 = vrcp.f32 %v523_v23 }
 0x3a5   : > { %v634_v26 = vpop.xlane.xlu1 %633 }
 0x3a6   : > { %1098 = vrcp.f32 %v634_v26 }
 0x3a8   : > { %v1097_v27 = vpop.eup %1096 }
 0x3ad   : > { %v745_v0 = vpop.xlane.xlu0 %744 }
 0x3ae   : > { %1100 = vrcp.f32 %v745_v0 }
 0x3b0   : > { %v1099_v33 = vpop.eup %1098 }
 0x3b1   : > { %v411_v45 = vpop.xlane.xlu0 %410 }
 0x3b2   : > { %1102 = vrcp.f32 %v411_v45 }
 0x3b8   : > { %v1101_v39 = vpop.eup %1100 }
 0x3bc   : > { %v1103_v46 = vpop.eup %1102 }
 0x3dc   : > { %v456_v21 = vpop.f32.mrb[4].mxu0 }
 0x3dd   : > { %v983_v22 = vpop.f32.mrb[5].mxu0  ;;  %v463_v48 = vmul.f32 %v1103_v46, %v456_v21 }
 0x3de   : > { %v459_v24 = vpop.f32.mrb[6].mxu0 }
 0x3df   : > { %v984_v25 = vpop.f32.mrb[7].mxu0 }
 0x3eb   : > { %v567_v28 = vpop.f32.mrb[8].mxu0 }
 0x3ec   : > { %v574_v29 = vmul.f32 %v1097_v27, %v567_v28  ;;  %v995_v30 = vpop.f32.mrb[9].mxu0 }
 0x3ed   : > { %v570_v31 = vpop.f32.mrb[10].mxu0 }
 0x3ee   : > { %798 = vrot.lane.b32.xlu1 %v574_v29, %s1217_s10  ;;  %v996_v32 = vpop.f32.mrb[11].mxu0 }
 0x3f3   : > { %v678_v34 = vpop.f32.mrb[12].mxu0 }
 0x3f4   : > { %v685_v35 = vmul.f32 %v1099_v33, %v678_v34  ;;  %v1007_v36 = vpop.f32.mrb[13].mxu0 }
 0x3f5   : > { %v681_v37 = vpop.f32.mrb[14].mxu0 }
 0x3f6   : > { %802 = vrot.lane.b32.xlu0 %v685_v35, %s1218_s11  ;;  %v1008_v38 = vpop.f32.mrb[15].mxu0 }
 0x3fb   : > { %v789_v40 = vpop.f32.mrb[16].mxu0 }
 0x3fc   : > { %v796_v41 = vmul.f32 %v1101_v39, %v789_v40  ;;  %v1019_v42 = vpop.f32.mrb[17].mxu0 }
 0x3fd   : > { %v792_v43 = vpop.f32.mrb[18].mxu0 }
 0x3fe   : > { %806 = vrot.lane.b32.xlu1 %v796_v41, %s1219_s17  ;;  %v1020_v44 = vpop.f32.mrb[19].mxu0 }
 0x460   : > { %v799_v47 = vpop.permute.xlu1 %798 }
 0x461   : > { %v809_v50 = vsel %vm355_vm2, %v463_v48, %v799_v47 }
 0x468   : > { %v803_v49 = vpop.permute.xlu0 %802 }
 0x469   : > { %v811_v51 = vsel %vm810_vm5, %v809_v50, %v803_v49 }
 0x470   : > { %v807_v52 = vpop.permute.xlu1 %806 }
 0x471   : > { %v813_v53 = vsel %vm812_vm6, %v811_v51, %v807_v52 }
 0x472   : > { %814 = vst.msk [vmem:[%s263_s12] sm:$0xff] %vm296_vm1, %v813_v53 }
 0x473   : > { %1147 = shalt.err (!%p1144_p5)
}
 0x474   : > { %s1148_s13 = scalar_lea.hbm %s1470_s16, 128  ;;  %s1152_s11 = scalar_lea.hbm %s1520_s5, 256 }
 0x475   : > { %p1149_p8 = scmp.ne.s32.totalorder %s1470_s16, %s1148_s13  ;;  %p1153_p1 = scmp.lt.u32.totalorder %s1470_s16, %s1520_s5 }
 0x476   : > { %p1154_p3 = scmp.lt.u32.totalorder %s1152_s11, %s1148_s13  ;;  %p1156_p11 = scmp.lt.u32.totalorder %s1148_s13, %s1470_s16 }
 0x477   : > { %p1150_p9 = pnand %p1149_p8, %p1531_p12 }
 0x478   : > { %p1155_p6 = por %p1154_p3, %p1153_p1 }
 0x479   : > { %p1151_p0 = pneg %p1150_p9 }
 0x47a   : > { %p1157_p13 = por %p1156_p11, %p1155_p6 }
 0x47c   : > { %p1158_p7 = pnand %p1157_p13, %p1151_p0 }
 0x47e   : > { %1161 = shalt.err (!%p1158_p7)
}
 0x47f   : > { %1023 = dma.vmem_to_hbm [thread:$0]  (%p1531_p12), %s1472_s14, 128, %s1470_s16, %s816_s22  }
 0x480 PF: > { %s841_s25 = sand.u32 1, %s1188_s18   ;;  %p1532_p10 = scmp.ne.s32.totalorder %s1525_s6, 0 }
 0x481   : > { %p1533_p2 = scmp.ge.s32.totalorder %s1200_s21, 2  ;;  %s842_s12 = scalar_lea.sflag [#allocation4], %s841_s25 }
 0x483   : > { %p1030_p4 = pnand %p1533_p2, %p1532_p10 }
 0x485   : > { %1183 = dma.done.wait (!%p1030_p4), %s842_s12, 128  }
 0x486   : > { %1185 = vsyncadd (!%p1030_p4), %s842_s12, 4294967168  ;;  %p18_p5 = scmp.ge.s32.totalorder %s1276_s24, 4   ;;  %s1534_s18 = smov %s1192_s19 }
 0x487   : > { %s1535_s19 = smov %s1196_s20  ;;  %s1536_s20 = smov %s1288_s27 }
 0x488   : > { %s1537_s21 = smov %s1276_s24  ;;  %20 = sbr.rel (!%p18_p5) target bundleno = 5 (0x5), region = 91 }
 0x48f   :  { %847 = vsyncpa [#allocation3], 1 }
 0x490   :  { %849 = vsyncpa [#allocation3 + $0x1], 1 }
 0x491   :  { %850 = vsyncpa [#allocation4], 1 }
 0x492   :  { %852 = vsyncpa [#allocation4 + $0x1], 1 }

</bundles_post_ra>
